<compile_context>
chip_gen: v7x
topology: tpu7x:2x2x1
jax: 0.10.0
libtpu: 0.0.40
codegen_flags: <defaults>
</compile_context>

<pallas_src>
import jax
import jax.numpy as jnp
from jax.experimental import pallas as pl
from jax.experimental.pallas import tpu as pltpu


def _mm_anchors_kernel(x_ref, w_ref, out_ref):
    """One agent-tile of MultiModalAnchors (mode_emb='linear', use_agent_type=True).

    x_ref   : [T, C]      streamed [emb | agent_type | valid],  C = E + K + 1
    w_ref   : [C, P*Ho]   [tile(W_emb^T,P) ; anchors@W_anc^T ; zeros]  (grid-invariant)
    out_ref : [T, P*Ho]   lane-dense output slab (unmasked 256-lane stores)
    """
    x = x_ref[...]
    # Single MXU matmul.  The zero last row of W makes the packed valid column
    # a no-op inside the contraction; the extra K rows are free in the MXU's
    # padded contraction dimension.
    acc = jnp.dot(x, w_ref[...], preferred_element_type=jnp.float32)
    # masked_fill(~valid, 0): exact (NaN-safe) zeros applied on the accumulator
    # right before the store.  VPU select is free filler on this store/HBM-bound
    # kernel.
    mask = x[:, -1:] != 0.0
    out_ref[...] = jnp.where(mask, acc, 0.0).astype(out_ref.dtype)


def _round_up(x, m):
    return -(-x // m) * m


def multi_modal_anchors(valid, emb, agent_type, anchors, w_emb_t, w_anc_t,
                        *, tile_n=None, out_dtype=jnp.float32):
    """valid: [N] bool, emb: [N,E], agent_type: [N,K], anchors: [K,P,H],
    w_emb_t: [E,Ho], w_anc_t: [H,Ho]  ->  [N, P, Ho] in out_dtype."""
    N, E = emb.shape
    K = agent_type.shape[1]
    _, P, H = anchors.shape
    Ho = w_emb_t.shape[1]
    PHo = P * Ho
    C = E + K + 1  # emb | agent_type | valid

    # ---- grid-invariant precompute (parameter-sized, once per call) ----
    # anchors @ W_anc^T : [K,P,H] @ [H,Ho] -> [K,P,Ho] -> flat [K, P*Ho]
    anchors_proj = jnp.einsum(
        "kph,ho->kpo", anchors.astype(jnp.float32), w_anc_t.astype(jnp.float32)
    ).reshape(K, PHo)
    # Stacked weight: W_emb^T lane-replicated P times (keeps the in-kernel
    # result lane-dense), then the anchor projection rows, then a zero row for
    # the packed valid column.
    w_stacked = jnp.concatenate(
        [jnp.tile(w_emb_t.astype(jnp.float32), (1, P)),   # [E, P*Ho]
         anchors_proj,                                    # [K, P*Ho]
         jnp.zeros((1, PHo), jnp.float32)],               # valid row (no-op)
        axis=0)                                           # [C, P*Ho]

    # ---- one streamed input: [emb | agent_type | valid] (single XLA concat,
    # no wrapper-side masking / padding round-trips) ----
    x = jnp.concatenate(
        [emb.astype(jnp.float32),
         agent_type.astype(jnp.float32),
         valid.astype(jnp.float32)[:, None]],
        axis=-1)                                          # [N, C]

    # ---- tiling over the agent axis ----
    if tile_n is None:
        if N <= 512:
            # Tiny N: one grid step (forcing a 2-way megacore split just pays
            # fixed per-step overhead twice for no bandwidth gain).
            tile_n = _round_up(max(N, 1), 8)
        else:
            # Large N: big tiles (amortize ~0.35us/step), >= 2 parallel steps.
            tile_n = min(2048, _round_up(pl.cdiv(N, 2), 8))
    n_tiles = pl.cdiv(N, tile_n)

    # Ragged N is handled by Pallas' partial last block (masked OOB writes);
    # safe because rows are independent (no cross-row reduction).
    out_flat = pl.pallas_call(
        _mm_anchors_kernel,
        out_shape=jax.ShapeDtypeStruct((N, PHo), out_dtype),
        grid_spec=pltpu.PrefetchScalarGridSpec(
            num_scalar_prefetch=0,
            grid=(n_tiles,),
            in_specs=[
                pl.BlockSpec((tile_n, C), lambda i: (i, 0)),   # streamed concat
                # Grid-invariant stacked weight: only ~tens of KB, so default
                # double-buffering is negligible; kept simple for portability.
                pl.BlockSpec((C, PHo), lambda i: (0, 0)),
            ],
            out_specs=pl.BlockSpec((tile_n, PHo), lambda i: (i, 0)),
        ),
        compiler_params=pltpu.CompilerParams(
            dimension_semantics=("parallel",)),
    )(x, w_stacked)

    return out_flat.reshape(N, P, Ho)


def reference(valid_bool, emb, agent_type, anchors, w_emb_t, w_anc_t):
    # Pure-JAX mirror of the PyTorch forward (mode_emb='linear', use_agent_type=True)
    anch = jnp.einsum("tk,kph->tph", agent_type, anchors)            # [N,P,H]
    emb_exp = jnp.broadcast_to(emb[:, None, :],
                               (emb.shape[0], anchors.shape[1], emb.shape[1]))
    cat = jnp.concatenate([emb_exp, anch], axis=-1)                  # [N,P,E+H]
    w_full = jnp.concatenate([w_emb_t, w_anc_t], axis=0)             # [E+H,Ho]
    out = jnp.einsum("tpc,co->tpo", cat, w_full)
    return jnp.where(valid_bool[:, None, None], out, 0.0)


if __name__ == "__main__":
    # Module hyper-params (small, consistent with the forward pass)
    n_scene, n_agent = 2, 64
    N = n_scene * n_agent          # 128
    n_pred = 8
    hidden_dim = 32
    emb_dim = 32
    scale = 1.0                    # use_agent_type=True -> n_anchors = 3

    key = jax.random.PRNGKey(0)
    k_anc, k_w, k_emb, k_at, k_val = jax.random.split(key, 5)

    # anchors: xavier_normal_-style init for shape [3, n_pred, hidden_dim]
    fan_in = n_pred * hidden_dim
    fan_out = 3 * hidden_dim
    xav_std = (2.0 / (fan_in + fan_out)) ** 0.5
    anchors = (jax.random.normal(k_anc, (3, n_pred, hidden_dim), jnp.float32)
               * xav_std * scale)

    # Linear(hidden_dim + emb_dim -> hidden_dim, bias=False) weight, transposed
    # and split into the emb-part and anchor-part of the concat.
    w_full_t = jax.random.normal(k_w, (emb_dim + hidden_dim, hidden_dim),
                                 jnp.float32) * 0.02
    w_emb_t = w_full_t[:emb_dim]           # [E, Ho]
    w_anc_t = w_full_t[emb_dim:]           # [H, Ho]

    # Inputs
    emb = jax.random.normal(k_emb, (N, emb_dim), jnp.float32)
    at_idx = jax.random.randint(k_at, (N,), 0, 3)
    agent_type = jax.nn.one_hot(at_idx, 3, dtype=jnp.float32)        # [N, 3]
    valid_bool = jax.random.bernoulli(k_val, 0.75, (N,))             # [N]

    ref = reference(valid_bool, emb, agent_type, anchors, w_emb_t, w_anc_t)

    # Run 1: default heuristic (N=128 <= 512 -> single tile, single grid step).
    out = multi_modal_anchors(valid_bool, emb, agent_type, anchors,
                              w_emb_t, w_anc_t)
    out = jax.block_until_ready(out)
    assert out.shape == (N, n_pred, hidden_dim)
    assert jnp.allclose(out, ref, atol=1e-4, rtol=1e-4), "mismatch vs reference"

    # Run 2: exercise the ragged-N path (128 = 2*48 + 32 -> masked last block).
    out2 = multi_modal_anchors(valid_bool, emb, agent_type, anchors,
                               w_emb_t, w_anc_t, tile_n=48)
    out2 = jax.block_until_ready(out2)
    assert jnp.allclose(out2, ref, atol=1e-4, rtol=1e-4), "mismatch (ragged path)"

    # Run 3: bf16-output option (halves output HBM traffic on the store-bound
    # path; f32 MXU accumulation, only the final store is bf16).
    out3 = multi_modal_anchors(valid_bool, emb, agent_type, anchors,
                               w_emb_t, w_anc_t, out_dtype=jnp.bfloat16)
    out3 = jax.block_until_ready(out3)
    assert jnp.allclose(out3.astype(jnp.float32), ref, atol=1e-2, rtol=1e-2), \
        "mismatch (bf16 output)"

    print("KERNEL_OK")
</pallas_src>

<mosaic_0001>
module attributes {stable_mosaic.version = 11 : i64} {
  func.func @_mm_anchors_kernel(%arg0: i32, %arg1: memref<128x36xf32, #tpu.memory_space<vmem>>, %arg2: memref<36x256xf32, #tpu.memory_space<vmem>>, %arg3: memref<128x256xf32, #tpu.memory_space<vmem>>) attributes {dimension_semantics = [#tpu.dimension_semantics<parallel>], iteration_bounds = array<i64: 1>, scalar_prefetch = 0 : i64, scratch_operands = 0 : i64, tpu.core_type = #tpu.core_type<tc>, window_params = [{transform_indices = @transform_0, window_bounds = array<i64: 128, 36>}, {pipeline_mode = #tpu.pipeline_mode<synchronous>, transform_indices = @transform_1, window_bounds = array<i64: 36, 256>}, {transform_indices = @transform_2, window_bounds = array<i64: 128, 256>}]} {
    %c0 = arith.constant 0 : index
    %c0_0 = arith.constant 0 : index
    %0 = vector.load %arg1[%c0, %c0_0] : memref<128x36xf32, #tpu.memory_space<vmem>>, vector<128x36xf32>
    %c0_1 = arith.constant 0 : index
    %c0_2 = arith.constant 0 : index
    %1 = vector.load %arg2[%c0_1, %c0_2] : memref<36x256xf32, #tpu.memory_space<vmem>>, vector<36x256xf32>
    %cst = arith.constant dense<0.000000e+00> : vector<128x256xf32>
    %2 = tpu.matmul %0, %1, %cst {dimension_numbers = #tpu.dot_dimension_numbers<[1], [0], [0], [1], [0, 0, 1, 1], [], []>} : vector<128x36xf32>, vector<36x256xf32>, vector<128x256xf32> -> vector<128x256xf32>
    %3 = vector.extract_strided_slice %0 {offsets = [0, 35], sizes = [128, 1], strides = [1, 1]} : vector<128x36xf32> to vector<128x1xf32>
    %cst_3 = arith.constant 0.000000e+00 : f32
    %4 = vector.broadcast %cst_3 : f32 to vector<128x1xf32>
    %5 = arith.cmpf one, %3, %4 : vector<128x1xf32>
    %cst_4 = arith.constant 0.000000e+00 : f32
    %6 = vector.shape_cast %5 : vector<128x1xi1> to vector<128x1xi1>
    %7 = vector.broadcast %6 : vector<128x1xi1> to vector<128x256xi1>
    %8 = vector.broadcast %cst_4 : f32 to vector<128x256xf32>
    %9 = arith.select %7, %2, %8 : vector<128x256xi1>, vector<128x256xf32>
    %c0_5 = arith.constant 0 : index
    %c0_6 = arith.constant 0 : index
    %10 = vector.load %arg3[%c0_5, %c0_6] : memref<128x256xf32, #tpu.memory_space<vmem>>, vector<128x256xf32>
    tpu.vector_store %arg3[%c0_5, %c0_6], %9 {strides = array<i32>} : memref<128x256xf32, #tpu.memory_space<vmem>>, vector<128x256xf32>,
    return
  }
  func.func @transform_0(%arg0: i32) -> (i32, i32) {
    %c0_i32 = arith.constant 0 : i32
    %c0_i32_0 = arith.constant 0 : i32
    return %arg0, %c0_i32 : i32, i32
  }
  func.func @transform_1(%arg0: i32) -> (i32, i32) {
    %c0_i32 = arith.constant 0 : i32
    %c0_i32_0 = arith.constant 0 : i32
    %c0_i32_1 = arith.constant 0 : i32
    return %c0_i32, %c0_i32_0 : i32, i32
  }
  func.func @transform_2(%arg0: i32) -> (i32, i32) {
    %c0_i32 = arith.constant 0 : i32
    %c0_i32_0 = arith.constant 0 : i32
    return %arg0, %c0_i32 : i32, i32
  }
}

</mosaic_0001>

<bundles_post_ra>
// kernel: tpu_custom_call.1
= control target key start
LH: loop header
LB: loop body
LE: loop exit
PB: predicated region body
PF: predicated region fallthrough
CT: control target
= control target key end

     0   :  { %v495_v7 = vmov 0.0   ;;  %v496_v12 = vmov 35   ;;  %v497_v18 = vmov 0   ;;  %vm87_vm3 = vcmask 1043456   ;;  %s693_s0 = inlined_call_operand.vmem [shape: f32[128,36], index: 0, kind: input, shape index: {}]   ;;  %s694_s1 = inlined_call_operand.vmem [shape: f32[36,256], index: 1, kind: input, shape index: {}]   ;;  %s695_s2 = inlined_call_operand.hbm [shape: f32[128,256], index: 2, kind: output, shape index: {}]  }
   0x1   :  { %v29_v0 = vld [vmem:[%s694_s1 + $0x8] sm:$0xff]  ;;  %v31_v1 = vld [vmem:[%s694_s1 + $0x18] sm:$0xff]  ;;  %v28_v2 = vld [vmem:[%s694_s1] sm:$0xff]  ;;  %158 = vmatprep.mubr.f32.mxu0 %v495_v7  ;;  %206 = vmatprep.mubr.f32.mxu1 %v495_v7 }
   0x2   :  { %v449_v3 = vpack.c.bf16 %v31_v1, %v29_v0  ;;  %v30_v4 = vld [vmem:[%s694_s1 + $0x10] sm:$0xff]  ;;  %v33_v5 = vld [vmem:[%s694_s1 + $0x28] sm:$0xff]  ;;  %v35_v6 = vld [vmem:[%s694_s1 + $0x38] sm:$0xff]  ;;  %470 = vset.pattern.permute.xlu1 %v496_v12  ;;  %469 = vset.pattern.permute.xlu0 %v496_v12 }
   0x3   :  { %v451_v8 = vpack.c.bf16 %v30_v4, %v28_v2  ;;  %v453_v9 = vpack.c.bf16 %v35_v6, %v33_v5  ;;  %v32_v10 = vld [vmem:[%s694_s1 + $0x20] sm:$0xff]  ;;  %v34_v11 = vld [vmem:[%s694_s1 + $0x30] sm:$0xff]  ;;  %v13_v15 = vld [vmem:[%s693_s0 + $0x8] sm:$0xff] }
   0x4   :  { %450 = vmatprep.subr.bf16.mxu0 %v449_v3  ;;  %457 = vmatprep.subr.bf16.mxu1 %v449_v3  ;;  %v12_v13 = vld [vmem:[%s693_s0] sm:$0xff]  ;;  %v455_v14 = vpack.c.bf16 %v34_v11, %v32_v10  ;;  %v14_v16 = vld [vmem:[%s693_s0 + $0x10] sm:$0xff]  ;;  %v554_v17 = vld [vmem:[%s693_s0 + $0x18] sm:$0xff]  ;;  %vm256_vm2 = vcmp.ne.f32.partialorder %v13_v15, 0.0 }
   0x5   :  { %452 = vmatpush1.bf16.msra.mxu0 %v451_v8  ;;  %460 = vmatpush1.bf16.msra.mxu1 %v451_v8  ;;  %vm255_vm0 = vcmp.ne.f32.partialorder %v12_v13, 0.0  ;;  %vm257_vm1 = vcmp.ne.f32.partialorder %v14_v16, 0.0  ;;  %v37_v20 = vld [vmem:[%s694_s1 + $0x48] sm:$0xf]  ;;  %vm258_vm4 = vcmp.ne.f32.partialorder %v554_v17, 0.0  ;;  %v272_v22 = vsel %vm256_vm2, 1, %v497_v18 }
   0x6   :  { %454 = vmatprep.subr.bf16.mxu0 %v453_v9  ;;  %458 = vmatprep.subr.bf16.mxu1 %v453_v9  ;;  %v271_v19 = vsel %vm255_vm0, 1, %v497_v18  ;;  %v273_v21 = vsel %vm257_vm1, 1, %v497_v18  ;;  %v566_v23 = vld [vmem:[%s693_s0 + $0x20] sm:$0xff]  ;;  %v571_v24 = vld [vmem:[%s693_s0 + $0x28] sm:$0xff]  ;;  %v274_v25 = vsel %vm258_vm4, 1, %v497_v18 }
   0x7   :  { %288 = vperm.xlu0 %469, %v271_v19   ;;  %294 = vperm.xlu1 %470, %v273_v21   ;;  %v36_v26 = vld [vmem:[%s694_s1 + $0x40] sm:$0xf]  ;;  %vm260_vm5 = vcmp.ne.f32.partialorder %v571_v24, 0.0  ;;  %vm259_vm6 = vcmp.ne.f32.partialorder %v566_v23, 0.0 }
   0x9   :  { %456 = vmatpush1.bf16.msra.mxu0 %v455_v14  ;;  %461 = vmatpush1.bf16.msra.mxu1 %v455_v14 }
   0xa   :  { %431 = vmatprep.subr.msk.mxu0 %vm87_vm3, %v37_v20  ;;  %459 = vmatprep.subr.msk.mxu1 %vm87_vm3, %v37_v20 }
   0xb   :  { %7 = vsyncpa [#allocation3], 0  ;;  %vm38_vm7 = vcmask 293888   ;;  %v20_v27 = vld [vmem:[%s693_s0 + $0x40] sm:$0xff]  ;;  %291 = vperm.xlu0 %469, %v272_v22   ;;  %297 = vperm.xlu1 %470, %v274_v25   ;;  %v589_v28 = vld [vmem:[%s693_s0 + $0x30] sm:$0xff]  ;;  %v276_v30 = vsel %vm260_vm5, 1, %v497_v18 }
   0xc   :  { %v594_v29 = vld [vmem:[%s693_s0 + $0x38] sm:$0xff]  ;;  %v275_v31 = vsel %vm259_vm6, 1, %v497_v18  ;;  %vm261_vm9 = vcmp.ne.f32.partialorder %v589_v28, 0.0  ;;  %v21_v32 = vld [vmem:[%s693_s0 + $0x48] sm:$0xff]  ;;  %vm263_vm11 = vcmp.ne.f32.partialorder %v20_v27, 0.0  ;;  %v22_v35 = vld [vmem:[%s693_s0 + $0x50] sm:$0xff] }
   0xd   :  { %432 = vmatpush1.msk.msra.mxu0 %vm87_vm3, %v36_v26  ;;  %462 = vmatpush1.msk.msra.mxu1 %vm87_vm3, %v36_v26  ;;  %vm262_vm8 = vcmp.ne.f32.partialorder %v594_v29, 0.0  ;;  %v277_v34 = vsel %vm261_vm9, 1, %v497_v18  ;;  %vm264_vm10 = vcmp.ne.f32.partialorder %v21_v32, 0.0  ;;  %v23_v36 = vld [vmem:[%s693_s0 + $0x58] sm:$0xff]  ;;  %v279_v38 = vsel %vm263_vm11, 1, %v497_v18  ;;  %v24_v39 = vld [vmem:[%s693_s0 + $0x60] sm:$0xff] }
   0xe   :  { %433 = vmatmul.mubr.msk.f32.vlgmr.msra.gmra.mrb[0].mxu0 %vm38_vm7, %v12_v13  ;;  %441 = vmatmul.mubr.msk.f32.vlgmr.msra.gmra.mrb[0].mxu1 %vm38_vm7, %v20_v27  ;;  %v278_v33 = vsel %vm262_vm8, 1, %v497_v18  ;;  %v280_v37 = vsel %vm264_vm10, 1, %v497_v18  ;;  %vm266_vm12 = vcmp.ne.f32.partialorder %v23_v36, 0.0  ;;  %vm265_vm13 = vcmp.ne.f32.partialorder %v22_v35, 0.0  ;;  %v25_v40 = vld [vmem:[%s693_s0 + $0x68] sm:$0xff]  ;;  %v26_v43 = vld [vmem:[%s693_s0 + $0x70] sm:$0xff] }
   0xf   :  { %164 = vmatprep.mubr.f32.mxu0 %v495_v7  ;;  %212 = vmatprep.mubr.f32.mxu1 %v495_v7  ;;  %v282_v41 = vsel %vm266_vm12, 1, %v497_v18  ;;  %v281_v42 = vsel %vm265_vm13, 1, %v497_v18  ;;  %vm268_vm14 = vcmp.ne.f32.partialorder %v25_v40, 0.0  ;;  %vm267_vm15 = vcmp.ne.f32.partialorder %v24_v39, 0.0  ;;  %v27_v44 = vld [vmem:[%s693_s0 + $0x78] sm:$0xff]  ;;  %s498_s0 = smov [#allocation2]  }
  0x10   :  { %303 = vperm.xlu1 %470, %v276_v30   ;;  %300 = vperm.xlu0 %469, %v275_v31   ;;  %v284_v45 = vsel %vm268_vm14, 1, %v497_v18  ;;  %v283_v46 = vsel %vm267_vm15, 1, %v497_v18  ;;  %vm270_vm0 = vcmp.ne.f32.partialorder %v27_v44, 0.0  ;;  %vm269_vm1 = vcmp.ne.f32.partialorder %v26_v43, 0.0  ;;  %s420_s4 = sshll.u32 %s498_s0, 4  ;;  %s421_s4 = int_to_ptr.vmem [resolvable:$true] %s420_s4 }
  0x11   :  { %v286_v47 = vsel %vm270_vm0, 1, %v497_v18  ;;  %v285_v48 = vsel %vm269_vm1, 1, %v497_v18  ;;  %s471_s5 = scalar_lea.vmem %s421_s4, 4096  ;;  %p476_p1 = scmp.lt.s32.totalorder %s421_s4, %s421_s4 }
  0x12   :  { %434 = vmatmul.mubr.msk.f32.gmra.mrb[2].mxu0 %vm38_vm7, %v13_v15  ;;  %442 = vmatmul.mubr.msk.f32.gmra.mrb[2].mxu1 %vm38_vm7, %v21_v32  ;;  %p472_p0 = scmp.ne.s32.totalorder %s421_s4, %s471_s5  ;;  %p477_p2 = scmp.lt.s32.totalorder %s471_s5, %s471_s5 }
  0x13   :  { %170 = vmatprep.mubr.f32.mxu0 %v495_v7  ;;  %218 = vmatprep.mubr.f32.mxu1 %v495_v7 }
  0x14   :  { %309 = vperm.xlu1 %470, %v278_v33   ;;  %306 = vperm.xlu0 %469, %v277_v34   ;;  %p478_p3 = por %p477_p2, %p476_p1 }
  0x16   :  { %435 = vmatmul.mubr.msk.f32.gmra.mrb[4].mxu0 %vm38_vm7, %v14_v16  ;;  %443 = vmatmul.mubr.msk.f32.gmra.mrb[4].mxu1 %vm38_vm7, %v22_v35  ;;  %p479_p4 = pnand %p478_p3, %p472_p0 }
  0x17   :  { %176 = vmatprep.mubr.f32.mxu0 %v495_v7  ;;  %224 = vmatprep.mubr.f32.mxu1 %v495_v7 }
  0x18   :  { %315 = vperm.xlu1 %470, %v280_v37   ;;  %312 = vperm.xlu0 %469, %v279_v38  }
  0x1a   :  { %436 = vmatmul.mubr.msk.f32.gmra.mrb[6].mxu0 %vm38_vm7, %v554_v17  ;;  %444 = vmatmul.mubr.msk.f32.gmra.mrb[6].mxu1 %vm38_vm7, %v23_v36 }
  0x1b   :  { %182 = vmatprep.mubr.f32.mxu0 %v495_v7  ;;  %230 = vmatprep.mubr.f32.mxu1 %v495_v7 }
  0x1c   :  { %321 = vperm.xlu1 %470, %v282_v41   ;;  %318 = vperm.xlu0 %469, %v281_v42  }
  0x1e   :  { %437 = vmatmul.mubr.msk.f32.gmra.mrb[8].mxu0 %vm38_vm7, %v566_v23  ;;  %445 = vmatmul.mubr.msk.f32.gmra.mrb[8].mxu1 %vm38_vm7, %v24_v39 }
  0x1f   :  { %188 = vmatprep.mubr.f32.mxu0 %v495_v7  ;;  %236 = vmatprep.mubr.f32.mxu1 %v495_v7 }
  0x20   :  { %327 = vperm.xlu1 %470, %v284_v45   ;;  %324 = vperm.xlu0 %469, %v283_v46  }
  0x22   :  { %438 = vmatmul.mubr.msk.f32.gmra.mrb[10].mxu0 %vm38_vm7, %v571_v24  ;;  %446 = vmatmul.mubr.msk.f32.gmra.mrb[10].mxu1 %vm38_vm7, %v25_v40 }
  0x23   :  { %194 = vmatprep.mubr.f32.mxu0 %v495_v7  ;;  %242 = vmatprep.mubr.f32.mxu1 %v495_v7 }
  0x24   :  { %333 = vperm.xlu1 %470, %v286_v47   ;;  %330 = vperm.xlu0 %469, %v285_v48  }
  0x26   :  { %439 = vmatmul.mubr.msk.f32.gmra.mrb[12].mxu0 %vm38_vm7, %v589_v28  ;;  %447 = vmatmul.mubr.msk.f32.gmra.mrb[12].mxu1 %vm38_vm7, %v26_v43 }
  0x27   :  { %200 = vmatprep.mubr.f32.mxu0 %v495_v7  ;;  %248 = vmatprep.mubr.f32.mxu1 %v495_v7 }
  0x2a   :  { %440 = vmatmul.mubr.msk.f32.gmra.mrb[14].mxu0 %vm38_vm7, %v594_v29  ;;  %448 = vmatmul.mubr.msk.f32.gmra.mrb[14].mxu1 %vm38_vm7, %v27_v44 }
  0x86   :  { %v289_v49 = vpop.permute.xlu0 %288  ;;  %v295_v50 = vpop.permute.xlu1 %294 }
  0x87   :  { %vm335_vm2 = vcmp.eq.s32.totalorder %v289_v49, 1  ;;  %vm337_vm6 = vcmp.eq.s32.totalorder %v295_v50, 1 }
  0x8a   :  { %v292_v51 = vpop.permute.xlu0 %291  ;;  %v666_v52 = vpop.permute.xlu1 %297 }
  0x8b   :  { %vm336_vm4 = vcmp.eq.s32.totalorder %v292_v51, 1  ;;  %vm338_vm8 = vcmp.eq.s32.totalorder %v666_v52, 1 }
  0x8f   :  { %v668_v53 = vpop.permute.xlu0 %300  ;;  %v670_v54 = vpop.permute.xlu1 %303 }
  0x90   :  { %vm339_vm10 = vcmp.eq.s32.totalorder %v668_v53, 1  ;;  %vm340_vm12 = vcmp.eq.s32.totalorder %v670_v54, 1 }
  0x93   :  { %v672_v55 = vpop.permute.xlu0 %306  ;;  %v674_v56 = vpop.permute.xlu1 %309 }
  0x94   :  { %vm341_vm14 = vcmp.eq.s32.totalorder %v672_v55, 1  ;;  %vm342_vm0 = vcmp.eq.s32.totalorder %v674_v56, 1 }
  0x97   :  { %v313_v57 = vpop.permute.xlu0 %312  ;;  %v316_v58 = vpop.permute.xlu1 %315 }
  0x98   :  { %vm343_vm3 = vcmp.eq.s32.totalorder %v313_v57, 1  ;;  %vm344_vm5 = vcmp.eq.s32.totalorder %v316_v58, 1 }
  0x9b   :  { %v319_v3 = vpop.permute.xlu0 %318  ;;  %v322_v12 = vpop.permute.xlu1 %321 }
  0x9c   :  { %vm345_vm7 = vcmp.eq.s32.totalorder %v319_v3, 1  ;;  %vm346_vm9 = vcmp.eq.s32.totalorder %v322_v12, 1 }
  0x9f   :  { %v325_v21 = vpop.permute.xlu0 %324  ;;  %v328_v30 = vpop.permute.xlu1 %327 }
  0xa0   :  { %vm347_vm11 = vcmp.eq.s32.totalorder %v325_v21, 1  ;;  %vm348_vm13 = vcmp.eq.s32.totalorder %v328_v30, 1 }
  0xa3   :  { %v331_v39 = vpop.permute.xlu0 %330  ;;  %v334_v48 = vpop.permute.xlu1 %333 }
  0xa4   :  { %vm349_vm15 = vcmp.eq.s32.totalorder %v331_v39, 1  ;;  %vm350_vm1 = vcmp.eq.s32.totalorder %v334_v48, 1 }
  0xe1   :  { %v208_v59 = vpop.f32.mrb[0].mxu1  ;;  %v160_v60 = vpop.f32.mrb[0].mxu0 }
  0xe2   :  { %v367_v61 = vsel %vm343_vm3, %v208_v59, 0.0  ;;  %v351_v62 = vsel %vm335_vm2, %v160_v60, 0.0  ;;  %v162_v63 = vpop.f32.mrb[1].mxu0  ;;  %v210_v0 = vpop.f32.mrb[1].mxu1 }
  0xe3   :  { %399 = vst [vmem:[#allocation2 + $0x80] sm:$0xff] %v367_v61  ;;  %383 = vst [vmem:[#allocation2] sm:$0xff] %v351_v62  ;;  %v352_v1 = vsel %vm335_vm2, %v162_v63, 0.0  ;;  %v368_v2 = vsel %vm343_vm3, %v210_v0, 0.0 }
  0xe4   :  { %384 = vst [vmem:[#allocation2 + $0x8] sm:$0xff] %v352_v1  ;;  %400 = vst [vmem:[#allocation2 + $0x88] sm:$0xff] %v368_v2 }
  0xe5   :  { %v166_v4 = vpop.f32.mrb[2].mxu0  ;;  %v214_v5 = vpop.f32.mrb[2].mxu1 }
  0xe6   :  { %v353_v6 = vsel %vm336_vm4, %v166_v4, 0.0  ;;  %v369_v7 = vsel %vm344_vm5, %v214_v5, 0.0  ;;  %v168_v8 = vpop.f32.mrb[3].mxu0  ;;  %v216_v9 = vpop.f32.mrb[3].mxu1 }
  0xe7   :  { %385 = vst [vmem:[#allocation2 + $0x10] sm:$0xff] %v353_v6  ;;  %401 = vst [vmem:[#allocation2 + $0x90] sm:$0xff] %v369_v7  ;;  %v354_v10 = vsel %vm336_vm4, %v168_v8, 0.0  ;;  %v370_v11 = vsel %vm344_vm5, %v216_v9, 0.0 }
  0xe8   :  { %386 = vst [vmem:[#allocation2 + $0x18] sm:$0xff] %v354_v10  ;;  %402 = vst [vmem:[#allocation2 + $0x98] sm:$0xff] %v370_v11 }
  0xe9   :  { %v172_v13 = vpop.f32.mrb[4].mxu0  ;;  %v220_v14 = vpop.f32.mrb[4].mxu1 }
  0xea   :  { %v355_v15 = vsel %vm337_vm6, %v172_v13, 0.0  ;;  %v371_v16 = vsel %vm345_vm7, %v220_v14, 0.0  ;;  %v174_v17 = vpop.f32.mrb[5].mxu0  ;;  %v222_v18 = vpop.f32.mrb[5].mxu1 }
  0xeb   :  { %387 = vst [vmem:[#allocation2 + $0x20] sm:$0xff] %v355_v15  ;;  %403 = vst [vmem:[#allocation2 + $0xa0] sm:$0xff] %v371_v16  ;;  %v356_v19 = vsel %vm337_vm6, %v174_v17, 0.0  ;;  %v372_v20 = vsel %vm345_vm7, %v222_v18, 0.0 }
  0xec   :  { %388 = vst [vmem:[#allocation2 + $0x28] sm:$0xff] %v356_v19  ;;  %404 = vst [vmem:[#allocation2 + $0xa8] sm:$0xff] %v372_v20 }
  0xed   :  { %v178_v22 = vpop.f32.mrb[6].mxu0  ;;  %v226_v23 = vpop.f32.mrb[6].mxu1 }
  0xee   :  { %v357_v24 = vsel %vm338_vm8, %v178_v22, 0.0  ;;  %v373_v25 = vsel %vm346_vm9, %v226_v23, 0.0  ;;  %v180_v26 = vpop.f32.mrb[7].mxu0  ;;  %v228_v27 = vpop.f32.mrb[7].mxu1 }
  0xef   :  { %389 = vst [vmem:[#allocation2 + $0x30] sm:$0xff] %v357_v24  ;;  %405 = vst [vmem:[#allocation2 + $0xb0] sm:$0xff] %v373_v25  ;;  %v358_v28 = vsel %vm338_vm8, %v180_v26, 0.0  ;;  %v374_v29 = vsel %vm346_vm9, %v228_v27, 0.0 }
  0xf0   :  { %390 = vst [vmem:[#allocation2 + $0x38] sm:$0xff] %v358_v28  ;;  %406 = vst [vmem:[#allocation2 + $0xb8] sm:$0xff] %v374_v29 }
  0xf1   :  { %v184_v31 = vpop.f32.mrb[8].mxu0  ;;  %v232_v32 = vpop.f32.mrb[8].mxu1 }
  0xf2   :  { %v359_v33 = vsel %vm339_vm10, %v184_v31, 0.0  ;;  %v375_v34 = vsel %vm347_vm11, %v232_v32, 0.0  ;;  %v186_v35 = vpop.f32.mrb[9].mxu0  ;;  %v234_v36 = vpop.f32.mrb[9].mxu1 }
  0xf3   :  { %391 = vst [vmem:[#allocation2 + $0x40] sm:$0xff] %v359_v33  ;;  %407 = vst [vmem:[#allocation2 + $0xc0] sm:$0xff] %v375_v34  ;;  %v360_v37 = vsel %vm339_vm10, %v186_v35, 0.0  ;;  %v376_v38 = vsel %vm347_vm11, %v234_v36, 0.0 }
  0xf4   :  { %392 = vst [vmem:[#allocation2 + $0x48] sm:$0xff] %v360_v37  ;;  %408 = vst [vmem:[#allocation2 + $0xc8] sm:$0xff] %v376_v38 }
  0xf5   :  { %v190_v40 = vpop.f32.mrb[10].mxu0  ;;  %v238_v41 = vpop.f32.mrb[10].mxu1 }
  0xf6   :  { %v361_v42 = vsel %vm340_vm12, %v190_v40, 0.0  ;;  %v377_v43 = vsel %vm348_vm13, %v238_v41, 0.0  ;;  %v192_v44 = vpop.f32.mrb[11].mxu0  ;;  %v240_v45 = vpop.f32.mrb[11].mxu1 }
  0xf7   :  { %393 = vst [vmem:[#allocation2 + $0x50] sm:$0xff] %v361_v42  ;;  %409 = vst [vmem:[#allocation2 + $0xd0] sm:$0xff] %v377_v43  ;;  %v362_v46 = vsel %vm340_vm12, %v192_v44, 0.0  ;;  %v378_v47 = vsel %vm348_vm13, %v240_v45, 0.0 }
  0xf8   :  { %394 = vst [vmem:[#allocation2 + $0x58] sm:$0xff] %v362_v46  ;;  %410 = vst [vmem:[#allocation2 + $0xd8] sm:$0xff] %v378_v47 }
  0xf9   :  { %v196_v49 = vpop.f32.mrb[12].mxu0  ;;  %v244_v50 = vpop.f32.mrb[12].mxu1 }
  0xfa   :  { %v363_v51 = vsel %vm341_vm14, %v196_v49, 0.0  ;;  %v379_v52 = vsel %vm349_vm15, %v244_v50, 0.0  ;;  %v198_v53 = vpop.f32.mrb[13].mxu0  ;;  %v246_v54 = vpop.f32.mrb[13].mxu1 }
  0xfb   :  { %395 = vst [vmem:[#allocation2 + $0x60] sm:$0xff] %v363_v51  ;;  %411 = vst [vmem:[#allocation2 + $0xe0] sm:$0xff] %v379_v52  ;;  %v364_v57 = vsel %vm341_vm14, %v198_v53, 0.0  ;;  %v380_v58 = vsel %vm349_vm15, %v246_v54, 0.0 }
  0xfc   :  { %396 = vst [vmem:[#allocation2 + $0x68] sm:$0xff] %v364_v57  ;;  %412 = vst [vmem:[#allocation2 + $0xe8] sm:$0xff] %v380_v58 }
  0xfd   :  { %v202_v59 = vpop.f32.mrb[14].mxu0  ;;  %v250_v55 = vpop.f32.mrb[14].mxu1 }
  0xfe   :  { %v365_v60 = vsel %vm342_vm0, %v202_v59, 0.0  ;;  %v381_v61 = vsel %vm350_vm1, %v250_v55, 0.0  ;;  %v204_v62 = vpop.f32.mrb[15].mxu0  ;;  %v252_v63 = vpop.f32.mrb[15].mxu1 }
  0xff   :  { %397 = vst [vmem:[#allocation2 + $0x70] sm:$0xff] %v365_v60  ;;  %413 = vst [vmem:[#allocation2 + $0xf0] sm:$0xff] %v381_v61  ;;  %v366_v0 = vsel %vm342_vm0, %v204_v62, 0.0  ;;  %v382_v1 = vsel %vm350_vm1, %v252_v63, 0.0 }
 0x100   :  { %398 = vst [vmem:[#allocation2 + $0x78] sm:$0xff] %v366_v0  ;;  %414 = vst [vmem:[#allocation2 + $0xf8] sm:$0xff] %v382_v1 }
 0x101   :  { %482 = shalt.err (!%p479_p4)
}
 0x102   :  { %s483_s8 = scalar_lea.hbm %s695_s2, 4096 }
 0x103   :  { %p484_p5 = scmp.ne.s32.totalorder %s695_s2, %s483_s8  ;;  %p487_p6 = scmp.lt.u32.totalorder %s483_s8, %s695_s2 }
 0x105   :  { %p489_p7 = pnand %p487_p6, %p484_p5 }
 0x107   :  { %492 = shalt.err (!%p489_p7)
}
 0x108   :  { %s499_s13 = smov 256   ;;  %s500_s14 = smov 16  }
 0x109   :  { %426 = dma.vmem_to_hbm [thread:$0]  %s421_s4, 4096, %s695_s2, [#allocation3], %s499_s13, %s499_s13, %s500_s14  }
 0x10a   :  { %493 = dma.done.wait [#allocation3], 4096  }
 0x10b   :  { %494 = vsyncadd [#allocation3], 4294963200 }
 0x10c   :  { %430 = vsyncpa [#allocation3], 1 }

</bundles_post_ra>
